<compile_context>
chip_gen: v5e
topology: v5e:2x2
jax: 0.10.0
libtpu: 0.0.40
codegen_flags: <defaults>
</compile_context>

<pallas_src>
import jax
import jax.numpy as jnp
from jax import lax
from jax.experimental import pallas as pl
from jax.experimental.pallas import tpu as pltpu


_LANE = 128
_EPS = 1e-12  # guards rsqrt(0) for all-zero (e.g. ragged-tail) rows


def _round_up(x, m):
    return ((x + m - 1) // m) * m


def retmodel_kernel(text_ref, graph_ref, w_ref, b_ref, out_ref):
    # text_ref/graph_ref: bf16 [tb, 768]; w_ref: bf16 [1536, Cp]; b_ref: f32 [1, Cp]
    text = text_ref[...].astype(jnp.float32)

    # L2-normalize the text rows in f32 (matches torch F.normalize semantics);
    # rsqrt goes to the EUP slot, the scale is a cheap VPU broadcast-multiply.
    inv_norm = lax.rsqrt(jnp.sum(text * text, axis=-1, keepdims=True) + _EPS)
    text_n = (text * inv_norm).astype(jnp.bfloat16)

    # Single fused matmul over the stacked feature axis (K = 1536):
    #   [norm(text) | graph] @ [[W_text_eff], [W_graph_eff]] -> [tb, Cp]
    x = jnp.concatenate([text_n, graph_ref[...]], axis=-1)          # [tb, 1536] bf16
    logits = jnp.dot(x, w_ref[...], preferred_element_type=jnp.float32)

    out_ref[...] = (logits + b_ref[...]).astype(out_ref.dtype)


def fold_params(params):
    """Fold text_lr/graph_lr into pred_linear (exact: no nonlinearity between).

    Returns a single stacked, lane-dense (class dim padded to a multiple of
    128) bf16 weight [1536, Cp] and an f32 bias [1, Cp].
    """
    C = params["b_pred"].shape[-1]
    Cp = _round_up(max(C, _LANE), _LANE)

    w_t_eff = params["w_text"] @ params["w_pred_text"]          # [768, C] f32
    w_g_eff = params["w_graph"] @ params["w_pred_graph"]        # [768, C] f32
    b_eff = (params["b_text"] @ params["w_pred_text"]
             + params["b_graph"] @ params["w_pred_graph"]
             + params["b_pred"])                                # [1, C]  f32

    w_stacked = jnp.concatenate([w_t_eff, w_g_eff], axis=0)     # [1536, C]
    pad = ((0, 0), (0, Cp - C))
    return {
        "w_eff": jnp.pad(w_stacked, pad).astype(jnp.bfloat16),
        "b_eff": jnp.pad(b_eff, pad).astype(jnp.float32),
        "num_classes": C,
    }


def retmodel_forward(text_features, graph_features, folded, *, block_b=1024):
    """text_features, graph_features: [B, 768] (any float dtype; streamed as bf16)."""
    B, D = text_features.shape
    C = folded["num_classes"]
    Cp = folded["b_eff"].shape[-1]

    # bf16 operand streams halve the dominant [B,768] HBM traffic; the matmul
    # still accumulates in f32.
    text_features = text_features.astype(jnp.bfloat16)
    graph_features = graph_features.astype(jnp.bfloat16)

    # Batch tile: multiple of 8 sublanes, and >=2 grid steps whenever B allows
    # so the "parallel" batch axis shards across both TensorCores on v7x.
    # Capped at block_b so the double-buffered pipeline stays inside VMEM on
    # every generation (incl. v7x's 64 MiB per TC).
    tb = min(block_b, max(8, _round_up(pl.cdiv(B, 2), 8)))
    grid = (pl.cdiv(B, tb),)   # ragged trailing block; no wrapper-side padding

    flops = 2 * B * (2 * D) * Cp + 3 * B * D            # fused matmul + normalize
    bytes_accessed = (2 * (2 * B * D)                   # bf16 inputs
                      + 2 * (2 * D) * Cp                # bf16 stacked weight
                      + 4 * Cp                          # f32 bias
                      + 2 * B * Cp)                     # bf16 output

    vmem_limit = min(
        _round_up(
            2 * 2 * tb * D * 2          # two bf16 input streams, double-buffered
            + 2 * tb * Cp * 2           # bf16 output, double-buffered
            + 2 * (2 * D) * Cp * 2      # resident stacked weight (+ spare buffer)
            + 6 * tb * D * 2            # in-kernel f32 / concat temporaries
            + (4 << 20),                # headroom for compiler scratch
            1 << 20),
        32 << 20)

    out = pl.pallas_call(
        retmodel_kernel,
        out_shape=jax.ShapeDtypeStruct((B, Cp), jnp.bfloat16),
        grid_spec=pltpu.PrefetchScalarGridSpec(
            num_scalar_prefetch=0,
            grid=grid,
            in_specs=[
                pl.BlockSpec((tb, D), lambda i: (i, 0)),       # text tile
                pl.BlockSpec((tb, D), lambda i: (i, 0)),       # graph tile
                pl.BlockSpec((2 * D, Cp), lambda i: (0, 0)),   # stacked weight (resident)
                pl.BlockSpec((1, Cp), lambda i: (0, 0)),       # bias (resident)
            ],
            out_specs=pl.BlockSpec((tb, Cp), lambda i: (i, 0)),
        ),
        compiler_params=pltpu.CompilerParams(
            dimension_semantics=("parallel",),
            vmem_limit_bytes=vmem_limit,
        ),
        cost_estimate=pl.CostEstimate(
            flops=flops, transcendentals=B, bytes_accessed=bytes_accessed),
    )(text_features, graph_features, folded["w_eff"], folded["b_eff"])

    return out[:, :C].astype(jnp.float32)


def init_params(key, in_dim=768, proj_dim=256, num_classes=16):
    ks = jax.random.split(key, 6)
    scale_in = 1.0 / jnp.sqrt(in_dim)
    scale_cat = 1.0 / jnp.sqrt(2 * proj_dim)
    w_text = jax.random.uniform(ks[0], (in_dim, proj_dim), jnp.float32,
                                -scale_in, scale_in)
    b_text = jax.random.uniform(ks[1], (1, proj_dim), jnp.float32,
                                -scale_in, scale_in)
    w_graph = jax.random.uniform(ks[2], (in_dim, proj_dim), jnp.float32,
                                 -scale_in, scale_in)
    b_graph = jax.random.uniform(ks[3], (1, proj_dim), jnp.float32,
                                 -scale_in, scale_in)
    w_pred = jax.random.uniform(ks[4], (2 * proj_dim, num_classes), jnp.float32,
                                -scale_cat, scale_cat)
    b_pred = jax.random.uniform(ks[5], (1, num_classes), jnp.float32,
                                -scale_cat, scale_cat)
    return {
        "w_text": w_text, "b_text": b_text,
        "w_graph": w_graph, "b_graph": b_graph,
        "w_pred_text": w_pred[:proj_dim],       # first half of concat = text rep
        "w_pred_graph": w_pred[proj_dim:],      # second half = graph rep
        "b_pred": b_pred,
    }


def reference_forward(text_features, graph_features, params):
    """Unfolded f32 reference matching the PyTorch module's forward."""
    t = text_features / jnp.linalg.norm(text_features, axis=-1, keepdims=True)
    t_rep = t @ params["w_text"] + params["b_text"]
    g_rep = graph_features @ params["w_graph"] + params["b_graph"]
    cat = jnp.concatenate([t_rep, g_rep], axis=1)
    w_pred = jnp.concatenate([params["w_pred_text"], params["w_pred_graph"]], axis=0)
    return cat @ w_pred + params["b_pred"]


if __name__ == "__main__":
    key = jax.random.PRNGKey(0)
    k_params, k_text, k_graph = jax.random.split(key, 3)

    B, IN_DIM, NUM_CLASSES = 8, 768, 16
    params = init_params(k_params, in_dim=IN_DIM, num_classes=NUM_CLASSES)
    folded = fold_params(params)

    # stand-ins for the frozen pretrained encoder outputs (768-d features)
    text_features = jax.random.normal(k_text, (B, IN_DIM), jnp.float32)
    graph_features = jax.random.normal(k_graph, (B, IN_DIM), jnp.float32)

    out = retmodel_forward(text_features, graph_features, folded)
    out = jax.block_until_ready(out)

    ref = reference_forward(text_features, graph_features, params)
    assert out.shape == (B, NUM_CLASSES)
    # bf16 operand/output quantization vs the f32 reference -> loose-ish tolerance.
    assert jnp.allclose(out, ref, atol=2e-2, rtol=2e-2), \
        float(jnp.max(jnp.abs(out - ref)))

    print("KERNEL_OK")
</pallas_src>

<mosaic_0001>
module attributes {stable_mosaic.version = 11 : i64} {
  func.func @retmodel_kernel(%arg0: i32, %arg1: memref<8x768xbf16, #tpu.memory_space<vmem>>, %arg2: memref<8x768xbf16, #tpu.memory_space<vmem>>, %arg3: memref<1536x128xbf16, #tpu.memory_space<vmem>>, %arg4: memref<1x128xf32, #tpu.memory_space<vmem>>, %arg5: memref<8x128xbf16, #tpu.memory_space<vmem>>) attributes {dimension_semantics = [#tpu.dimension_semantics<parallel>], iteration_bounds = array<i64: 1>, scalar_prefetch = 0 : i64, scratch_operands = 0 : i64, tpu.core_type = #tpu.core_type<tc>, window_params = [{transform_indices = @transform_0, window_bounds = array<i64: 8, 768>}, {transform_indices = @transform_1, window_bounds = array<i64: 8, 768>}, {pipeline_mode = #tpu.pipeline_mode<synchronous>, transform_indices = @transform_2, window_bounds = array<i64: 1536, 128>}, {pipeline_mode = #tpu.pipeline_mode<synchronous>, transform_indices = @transform_3, window_bounds = array<i64: 1, 128>}, {transform_indices = @transform_4, window_bounds = array<i64: 8, 128>}]} {
    %c0 = arith.constant 0 : index
    %c0_0 = arith.constant 0 : index
    %0 = vector.load %arg1[%c0, %c0_0] : memref<8x768xbf16, #tpu.memory_space<vmem>>, vector<8x768xbf16>
    %1 = arith.extf %0 : vector<8x768xbf16> to vector<8x768xf32>
    %2 = arith.mulf %1, %1 : vector<8x768xf32>
    %cst = arith.constant dense<0.000000e+00> : vector<8xf32>
    %3 = vector.multi_reduction <add>, %2, %cst [1] : vector<8x768xf32> to vector<8xf32>
    %4 = vector.shape_cast %3 : vector<8xf32> to vector<8x1xf32>
    %cst_1 = arith.constant 9.99999996E-13 : f32
    %5 = vector.broadcast %cst_1 : f32 to vector<8x1xf32>
    %6 = arith.addf %4, %5 : vector<8x1xf32>
    %7 = math.rsqrt %6 : vector<8x1xf32>
    %8 = vector.broadcast %7 : vector<8x1xf32> to vector<8x768xf32>
    %9 = arith.mulf %1, %8 : vector<8x768xf32>
    %10 = arith.truncf %9 : vector<8x768xf32> to vector<8x768xbf16>
    %c0_2 = arith.constant 0 : index
    %c0_3 = arith.constant 0 : index
    %11 = vector.load %arg2[%c0_2, %c0_3] : memref<8x768xbf16, #tpu.memory_space<vmem>>, vector<8x768xbf16>
    %12 = tpu.concatenate %10, %11 in 1 : vector<8x768xbf16>, vector<8x768xbf16> -> vector<8x1536xbf16>
    %c0_4 = arith.constant 0 : index
    %c0_5 = arith.constant 0 : index
    %13 = vector.load %arg3[%c0_4, %c0_5] : memref<1536x128xbf16, #tpu.memory_space<vmem>>, vector<1536x128xbf16>
    %cst_6 = arith.constant dense<0.000000e+00> : vector<8x128xf32>
    %14 = tpu.matmul %12, %13, %cst_6 {dimension_numbers = #tpu.dot_dimension_numbers<[1], [0], [0], [1], [0, 0, 1, 1], [], []>} : vector<8x1536xbf16>, vector<1536x128xbf16>, vector<8x128xf32> -> vector<8x128xf32>
    %c0_7 = arith.constant 0 : index
    %c0_8 = arith.constant 0 : index
    %15 = vector.load %arg4[%c0_7, %c0_8] : memref<1x128xf32, #tpu.memory_space<vmem>>, vector<1x128xf32>
    %16 = vector.broadcast %15 : vector<1x128xf32> to vector<8x128xf32>
    %17 = arith.addf %14, %16 : vector<8x128xf32>
    %18 = arith.truncf %17 : vector<8x128xf32> to vector<8x128xbf16>
    %c0_9 = arith.constant 0 : index
    %c0_10 = arith.constant 0 : index
    %19 = vector.load %arg5[%c0_9, %c0_10] : memref<8x128xbf16, #tpu.memory_space<vmem>>, vector<8x128xbf16>
    tpu.vector_store %arg5[%c0_9, %c0_10], %18 {strides = array<i32>} : memref<8x128xbf16, #tpu.memory_space<vmem>>, vector<8x128xbf16>,
    return
  }
  func.func @transform_0(%arg0: i32) -> (i32, i32) {
    %c0_i32 = arith.constant 0 : i32
    %c0_i32_0 = arith.constant 0 : i32
    return %arg0, %c0_i32 : i32, i32
  }
  func.func @transform_1(%arg0: i32) -> (i32, i32) {
    %c0_i32 = arith.constant 0 : i32
    %c0_i32_0 = arith.constant 0 : i32
    return %arg0, %c0_i32 : i32, i32
  }
  func.func @transform_2(%arg0: i32) -> (i32, i32) {
    %c0_i32 = arith.constant 0 : i32
    %c0_i32_0 = arith.constant 0 : i32
    %c0_i32_1 = arith.constant 0 : i32
    return %c0_i32, %c0_i32_0 : i32, i32
  }
  func.func @transform_3(%arg0: i32) -> (i32, i32) {
    %c0_i32 = arith.constant 0 : i32
    %c0_i32_0 = arith.constant 0 : i32
    %c0_i32_1 = arith.constant 0 : i32
    return %c0_i32, %c0_i32_0 : i32, i32
  }
  func.func @transform_4(%arg0: i32) -> (i32, i32) {
    %c0_i32 = arith.constant 0 : i32
    %c0_i32_0 = arith.constant 0 : i32
    return %arg0, %c0_i32 : i32, i32
  }
}

</mosaic_0001>

<bundles_post_ra>
// kernel: tpu_custom_call.1
= control target key start
LH: loop header
LB: loop body
LE: loop exit
PB: predicated region body
PF: predicated region fallthrough
CT: control target
= control target key end

     0   :  { %9 = vsyncpa [#allocation3], 0  ;;  %s1763_s0 = inlined_call_operand.hbm [shape: bf16[8,768], index: 0, kind: input, shape index: {}]   ;;  %s1764_s1 = inlined_call_operand.hbm [shape: bf16[8,768], index: 1, kind: input, shape index: {}]   ;;  %s1765_s2 = inlined_call_operand.hbm [shape: bf16[1536,128], index: 2, kind: input, shape index: {}]   ;;  %s1766_s3 = inlined_call_operand.vmem [shape: f32[1,128], index: 3, kind: input, shape index: {}]   ;;  %s1767_s4 = inlined_call_operand.hbm [shape: bf16[8,128], index: 4, kind: output, shape index: {}]  }
   0x1   :  { %10 = vsyncpa [#allocation6], 0  ;;  %s28_s17 = sshll.u32 %s1764_s1, 4  ;;  %s29_s17 = int_to_ptr.hbm [resolvable:$true] %s28_s17 }
   0x2   :  { %11 = vsyncpa [#allocation4], 0  ;;  %s1687_s18 = smov [#allocation5]   ;;  %s17_s22 = sshll.u32 %s1763_s0, 4  ;;  %s18_s22 = int_to_ptr.hbm [resolvable:$true] %s17_s22 }
   0x3   :  { %s30_s19 = sshll.u32 %s1687_s18, 4  ;;  %s1688_s23 = smov [#allocation2]   ;;  %s31_s19 = int_to_ptr.vmem [resolvable:$true] %s30_s19 }
   0x4   :  { %33 = dma.hbm_to_vmem [thread:$0]  %s29_s17, 384, %s31_s19, [#allocation6]  }
   0x5   :  { %s19_s24 = sshll.u32 %s1688_s23, 4  ;;  %s38_s27 = sshll.u32 %s1765_s2, 4  ;;  %s20_s24 = int_to_ptr.vmem [resolvable:$true] %s19_s24  ;;  %s39_s27 = int_to_ptr.hbm [resolvable:$true] %s38_s27 }
   0x6   :  { %22 = dma.hbm_to_vmem [thread:$0]  %s18_s22, 384, %s20_s24, [#allocation3]  }
   0x7   :  { %s1689_s1 = smov [#allocation7]   ;;  %s1690_s29 = smov 64  }
   0x8   :  { %s40_s28 = sshll.u32 %s1689_s1, 4  ;;  %s1691_s30 = smov 4   ;;  %s41_s28 = int_to_ptr.vmem [resolvable:$true] %s40_s28 }
   0x9   :  { %46 = dma.hbm_to_vmem [thread:$0]  %s39_s27, 12288, %s41_s28, [#allocation6], %s1690_s29, %s1690_s29, %s1691_s30  }
   0xa   :  { %1681 = dma.done.wait [#allocation3], 384  }
   0xb   :  { %1682 = vsyncadd [#allocation3], 4294966912 }
   0xc   :  { %1683 = dma.done.wait [#allocation6], 12672  }
   0xd   :  { %1684 = vsyncadd [#allocation6], 4294954624  ;;  %v61_v0 = vld [vmem:[#allocation2] sm:$0xff]  ;;  %v62_v1 = vld [vmem:[#allocation2 + $0x8] sm:$0xff]  ;;  %s1085_s8 = sshll.u32 %s1767_s4, 4  ;;  %s1086_s8 = int_to_ptr.hbm [resolvable:$true] %s1085_s8 }
   0xe   :  { %v63_v2 = vld [vmem:[#allocation2 + $0x10] sm:$0xff]  ;;  %v1727_v3 = vunpack.c.l.bf16 %v61_v0  ;;  %v1729_v4 = vunpack.c.h.bf16 %v61_v0  ;;  %v1731_v5 = vunpack.c.l.bf16 %v62_v1  ;;  %v1733_v6 = vunpack.c.h.bf16 %v62_v1  ;;  %v1487_v7 = vld [vmem:[#allocation7 + $0x38] sm:$0xff]  ;;  %v1486_v15 = vld [vmem:[#allocation7 + $0x30] sm:$0xff] }
   0xf   :  { %v1495_v8 = vld [vmem:[#allocation7 + $0x78] sm:$0xff]  ;;  %v1735_v11 = vunpack.c.l.bf16 %v63_v2  ;;  %920 = vmatpush.bf16.msra.mxu0 %v1487_v7  ;;  %v1494_v16 = vld [vmem:[#allocation7 + $0x70] sm:$0xff]  ;;  %v1743_v18 = vunpack.c.h.bf16 %v63_v2  ;;  %v1485_v24 = vld [vmem:[#allocation7 + $0x28] sm:$0xff] }
  0x10   :  { %v1503_v9 = vld [vmem:[#allocation7 + $0xb8] sm:$0xff]  ;;  %v70_v12 = vmul.f32 %v1727_v3, %v1727_v3  ;;  %v71_v13 = vmul.f32 %v1729_v4, %v1729_v4  ;;  %v72_v14 = vmul.f32 %v1731_v5, %v1731_v5  ;;  %933 = vmatpush.bf16.msra.mxu1 %v1495_v8  ;;  %v1502_v17 = vld [vmem:[#allocation7 + $0xb0] sm:$0xff]  ;;  %v73_v19 = vmul.f32 %v1733_v6, %v1733_v6  ;;  %v1493_v25 = vld [vmem:[#allocation7 + $0x68] sm:$0xff] }
  0x11   :  { %v1511_v10 = vld [vmem:[#allocation7 + $0xf8] sm:$0xff]  ;;  %946 = vmatpush.bf16.msra.mxu2 %v1503_v9  ;;  %v1510_v21 = vld [vmem:[#allocation7 + $0xf0] sm:$0xff]  ;;  %v74_v22 = vmul.f32 %v1735_v11, %v1735_v11  ;;  %v1501_v26 = vld [vmem:[#allocation7 + $0xa8] sm:$0xff]  ;;  %v75_v27 = vmul.f32 %v1743_v18, %v1743_v18 }
  0x12   :  { %v76_v20 = vadd.f32 %v71_v13, %v70_v12  ;;  %959 = vmatpush.bf16.msra.mxu3 %v1511_v10  ;;  %v1509_v29 = vld [vmem:[#allocation7 + $0xe8] sm:$0xff]  ;;  %v1484_v31 = vld [vmem:[#allocation7 + $0x20] sm:$0xff]  ;;  %v1483_v36 = vld [vmem:[#allocation7 + $0x18] sm:$0xff] }
  0x13   :  { %921 = vmatpush.bf16.msra.mxu0 %v1486_v15  ;;  %v1492_v32 = vld [vmem:[#allocation7 + $0x60] sm:$0xff]  ;;  %v1491_v37 = vld [vmem:[#allocation7 + $0x58] sm:$0xff]  ;;  %v1482_v40 = vld [vmem:[#allocation7 + $0x10] sm:$0xff] }
  0x14   :  { %v77_v23 = vadd.f32 %v76_v20, %v72_v14  ;;  %934 = vmatpush.bf16.msra.mxu1 %v1494_v16  ;;  %v1500_v33 = vld [vmem:[#allocation7 + $0xa0] sm:$0xff]  ;;  %v1499_v38 = vld [vmem:[#allocation7 + $0x98] sm:$0xff]  ;;  %v1490_v41 = vld [vmem:[#allocation7 + $0x50] sm:$0xff] }
  0x15   :  { %947 = vmatpush.bf16.msra.mxu2 %v1502_v17  ;;  %v1508_v35 = vld [vmem:[#allocation7 + $0xe0] sm:$0xff]  ;;  %v1507_v39 = vld [vmem:[#allocation7 + $0xd8] sm:$0xff]  ;;  %v1498_v42 = vld [vmem:[#allocation7 + $0x90] sm:$0xff] }
  0x16   :  { %v78_v28 = vadd.f32 %v77_v23, %v73_v19  ;;  %960 = vmatpush.bf16.msra.mxu3 %v1510_v21  ;;  %v1506_v43 = vld [vmem:[#allocation7 + $0xd0] sm:$0xff]  ;;  %v1481_v44 = vld [vmem:[#allocation7 + $0x8] sm:$0xff]  ;;  %v1480_v48 = vld [vmem:[#allocation7] sm:$0xff] }
  0x17   :  { %922 = vmatpush.bf16.msra.mxu0 %v1485_v24  ;;  %v1489_v45 = vld [vmem:[#allocation7 + $0x48] sm:$0xff]  ;;  %v1488_v49 = vld [vmem:[#allocation7 + $0x40] sm:$0xff]  ;;  %v1519_v52 = vld [vmem:[#allocation7 + $0x138] sm:$0xff] }
  0x18   :  { %v79_v30 = vadd.f32 %v78_v28, %v74_v22  ;;  %935 = vmatpush.bf16.msra.mxu1 %v1493_v25  ;;  %v1497_v46 = vld [vmem:[#allocation7 + $0x88] sm:$0xff]  ;;  %v1496_v50 = vld [vmem:[#allocation7 + $0x80] sm:$0xff]  ;;  %v1527_v53 = vld [vmem:[#allocation7 + $0x178] sm:$0xff] }
  0x19   :  { %948 = vmatpush.bf16.msra.mxu2 %v1501_v26  ;;  %v1505_v47 = vld [vmem:[#allocation7 + $0xc8] sm:$0xff]  ;;  %v1504_v51 = vld [vmem:[#allocation7 + $0xc0] sm:$0xff]  ;;  %v1535_v54 = vld [vmem:[#allocation7 + $0x1b8] sm:$0xff] }
  0x1a   :  { %v80_v34 = vadd.f32 %v79_v30, %v75_v27  ;;  %961 = vmatpush.bf16.msra.mxu3 %v1509_v29  ;;  %v1543_v55 = vld [vmem:[#allocation7 + $0x1f8] sm:$0xff]  ;;  %v1518_v56 = vld [vmem:[#allocation7 + $0x130] sm:$0xff]  ;;  %v1517_v60 = vld [vmem:[#allocation7 + $0x128] sm:$0xff] }
  0x1b   :  { %923 = vmatpush.bf16.msra.mxu0 %v1484_v31  ;;  %v1526_v57 = vld [vmem:[#allocation7 + $0x170] sm:$0xff]  ;;  %v1525_v61 = vld [vmem:[#allocation7 + $0x168] sm:$0xff]  ;;  %v1516_v0 = vld [vmem:[#allocation7 + $0x120] sm:$0xff] }
  0x1c   :  { %81 = vadd.xlane.f32.xlu0 %v80_v34  ;;  %936 = vmatpush.bf16.msra.mxu1 %v1492_v32  ;;  %v1534_v58 = vld [vmem:[#allocation7 + $0x1b0] sm:$0xff]  ;;  %v1533_v62 = vld [vmem:[#allocation7 + $0x1a8] sm:$0xff]  ;;  %v1524_v1 = vld [vmem:[#allocation7 + $0x160] sm:$0xff] }
  0x1d   :  { %949 = vmatpush.bf16.msra.mxu2 %v1500_v33  ;;  %v1542_v59 = vld [vmem:[#allocation7 + $0x1f0] sm:$0xff]  ;;  %v1541_v63 = vld [vmem:[#allocation7 + $0x1e8] sm:$0xff]  ;;  %v1532_v2 = vld [vmem:[#allocation7 + $0x1a0] sm:$0xff] }
  0x1e   :  { %962 = vmatpush.bf16.msra.mxu3 %v1508_v35  ;;  %v1540_v7 = vld [vmem:[#allocation7 + $0x1e0] sm:$0xff]  ;;  %v1515_v8 = vld [vmem:[#allocation7 + $0x118] sm:$0xff]  ;;  %v1514_v13 = vld [vmem:[#allocation7 + $0x110] sm:$0xff] }
  0x1f   :  { %924 = vmatpush.bf16.msra.mxu0 %v1483_v36  ;;  %v1523_v9 = vld [vmem:[#allocation7 + $0x158] sm:$0xff]  ;;  %v1522_v14 = vld [vmem:[#allocation7 + $0x150] sm:$0xff]  ;;  %v1513_v17 = vld [vmem:[#allocation7 + $0x108] sm:$0xff] }
  0x20   :  { %937 = vmatpush.bf16.msra.mxu1 %v1491_v37  ;;  %v1531_v10 = vld [vmem:[#allocation7 + $0x198] sm:$0xff]  ;;  %v1530_v15 = vld [vmem:[#allocation7 + $0x190] sm:$0xff]  ;;  %v1521_v19 = vld [vmem:[#allocation7 + $0x148] sm:$0xff] }
  0x21   :  { %950 = vmatpush.bf16.msra.mxu2 %v1499_v38  ;;  %v1539_v12 = vld [vmem:[#allocation7 + $0x1d8] sm:$0xff]  ;;  %v1538_v16 = vld [vmem:[#allocation7 + $0x1d0] sm:$0xff]  ;;  %v1529_v20 = vld [vmem:[#allocation7 + $0x188] sm:$0xff] }
  0x22   :  { %963 = vmatpush.bf16.msra.mxu3 %v1507_v39  ;;  %v1537_v21 = vld [vmem:[#allocation7 + $0x1c8] sm:$0xff]  ;;  %v1512_v22 = vld [vmem:[#allocation7 + $0x100] sm:$0xff] }
  0x23   :  { %925 = vmatpush.bf16.msra.mxu0 %v1482_v40  ;;  %v1520_v23 = vld [vmem:[#allocation7 + $0x140] sm:$0xff] }
  0x24   :  { %938 = vmatpush.bf16.msra.mxu1 %v1490_v41  ;;  %v1528_v24 = vld [vmem:[#allocation7 + $0x180] sm:$0xff] }
  0x25   :  { %951 = vmatpush.bf16.msra.mxu2 %v1498_v42  ;;  %v1536_v25 = vld [vmem:[#allocation7 + $0x1c0] sm:$0xff] }
  0x26   :  { %964 = vmatpush.bf16.msra.mxu3 %v1506_v43 }
  0x27   :  { %926 = vmatpush.bf16.msra.mxu0 %v1481_v44 }
  0x28   :  { %939 = vmatpush.bf16.msra.mxu1 %v1489_v45 }
  0x29   :  { %952 = vmatpush.bf16.msra.mxu2 %v1497_v46 }
  0x2a   :  { %965 = vmatpush.bf16.msra.mxu3 %v1505_v47 }
  0x2b   :  { %927 = vmatpush.bf16.msra.mxu0 %v1480_v48 }
  0x2c   :  { %940 = vmatpush.bf16.msra.mxu1 %v1488_v49  ;;  %v1551_v49 = vld [vmem:[#allocation7 + $0x238] sm:$0xff] }
  0x2d   :  { %953 = vmatpush.bf16.msra.mxu2 %v1496_v50  ;;  %v1559_v50 = vld [vmem:[#allocation7 + $0x278] sm:$0xff] }
  0x2e   :  { %966 = vmatpush.bf16.msra.mxu3 %v1504_v51  ;;  %v1567_v51 = vld [vmem:[#allocation7 + $0x2b8] sm:$0xff] }
  0x2f   :  { %972 = vmatpush.bf16.msrb.mxu0 %v1519_v52 }
  0x30   :  { %985 = vmatpush.bf16.msrb.mxu1 %v1527_v53  ;;  %v1566_v53 = vld [vmem:[#allocation7 + $0x2b0] sm:$0xff] }
  0x31   :  { %998 = vmatpush.bf16.msrb.mxu2 %v1535_v54  ;;  %v1574_v54 = vld [vmem:[#allocation7 + $0x2f0] sm:$0xff] }
  0x32   :  { %1011 = vmatpush.bf16.msrb.mxu3 %v1543_v55  ;;  %v1549_v55 = vld [vmem:[#allocation7 + $0x228] sm:$0xff] }
  0x33   :  { %973 = vmatpush.bf16.msrb.mxu0 %v1518_v56  ;;  %v1557_v56 = vld [vmem:[#allocation7 + $0x268] sm:$0xff] }
  0x34   :  { %986 = vmatpush.bf16.msrb.mxu1 %v1526_v57 }
  0x35   :  { %999 = vmatpush.bf16.msrb.mxu2 %v1534_v58  ;;  %v103_v58 = vld [vmem:[#allocation5] sm:$0xff] }
  0x36   :  { %1012 = vmatpush.bf16.msrb.mxu3 %v1542_v59  ;;  %v1565_v59 = vld [vmem:[#allocation7 + $0x2a8] sm:$0xff] }
  0x37   :  { %974 = vmatpush.bf16.msrb.mxu0 %v1517_v60  ;;  %v1573_v60 = vld [vmem:[#allocation7 + $0x2e8] sm:$0xff] }
  0x38   :  { %987 = vmatpush.bf16.msrb.mxu1 %v1525_v61  ;;  %v130_v61 = vunpack.c.l.b16 %v103_v58 }
  0x39   :  { %1000 = vmatpush.bf16.msrb.mxu2 %v1533_v62  ;;  %v131_v62 = vunpack.c.h.b16 %v103_v58 }
  0x3a   :  { %1013 = vmatpush.bf16.msrb.mxu3 %v1541_v63 }
  0x3b   :  { %975 = vmatpush.bf16.msrb.mxu0 %v1516_v0 }
  0x3c   :  { %988 = vmatpush.bf16.msrb.mxu1 %v1524_v1  ;;  %v1564_v1 = vld [vmem:[#allocation7 + $0x2a0] sm:$0xff] }
  0x3d   :  { %1001 = vmatpush.bf16.msrb.mxu2 %v1532_v2  ;;  %v1572_v2 = vld [vmem:[#allocation7 + $0x2e0] sm:$0xff] }
  0x3e   :  { %1014 = vmatpush.bf16.msrb.mxu3 %v1540_v7  ;;  %v136_v7 = vpack.c.b16 %v130_v61, %v130_v61 }
  0x3f   :  { %976 = vmatpush.bf16.msrb.mxu0 %v1515_v8  ;;  %v137_v8 = vpack.c.b16 %v131_v62, %v131_v62 }
  0x40   :  { %989 = vmatpush.bf16.msrb.mxu1 %v1523_v9 }
  0x41   :  { %1002 = vmatpush.bf16.msrb.mxu2 %v1531_v10 }
  0x42   :  { %1015 = vmatpush.bf16.msrb.mxu3 %v1539_v12  ;;  %v1547_v12 = vld [vmem:[#allocation7 + $0x218] sm:$0xff] }
  0x43   :  { %977 = vmatpush.bf16.msrb.mxu0 %v1514_v13  ;;  %v1555_v13 = vld [vmem:[#allocation7 + $0x258] sm:$0xff] }
  0x44   :  { %990 = vmatpush.bf16.msrb.mxu1 %v1522_v14  ;;  %v1563_v14 = vld [vmem:[#allocation7 + $0x298] sm:$0xff] }
  0x45   :  { %1003 = vmatpush.bf16.msrb.mxu2 %v1530_v15  ;;  %v1571_v15 = vld [vmem:[#allocation7 + $0x2d8] sm:$0xff] }
  0x46   :  { %1016 = vmatpush.bf16.msrb.mxu3 %v1538_v16  ;;  %v1546_v16 = vld [vmem:[#allocation7 + $0x210] sm:$0xff] }
  0x47   :  { %978 = vmatpush.bf16.msrb.mxu0 %v1513_v17  ;;  %v1554_v17 = vld [vmem:[#allocation7 + $0x250] sm:$0xff] }
  0x48   :  { %991 = vmatpush.bf16.msrb.mxu1 %v1521_v19  ;;  %v1562_v19 = vld [vmem:[#allocation7 + $0x290] sm:$0xff] }
  0x49   :  { %1004 = vmatpush.bf16.msrb.mxu2 %v1529_v20  ;;  %v1570_v20 = vld [vmem:[#allocation7 + $0x2d0] sm:$0xff] }
  0x4a   :  { %1017 = vmatpush.bf16.msrb.mxu3 %v1537_v21  ;;  %v1545_v21 = vld [vmem:[#allocation7 + $0x208] sm:$0xff] }
  0x4b   :  { %979 = vmatpush.bf16.msrb.mxu0 %v1512_v22  ;;  %v1553_v22 = vld [vmem:[#allocation7 + $0x248] sm:$0xff] }
  0x4c   :  { %992 = vmatpush.bf16.msrb.mxu1 %v1520_v23  ;;  %v104_v23 = vld [vmem:[#allocation5 + $0x8] sm:$0xff] }
  0x4d   :  { %1005 = vmatpush.bf16.msrb.mxu2 %v1528_v24  ;;  %v1561_v24 = vld [vmem:[#allocation7 + $0x288] sm:$0xff] }
  0x4e   :  { %1018 = vmatpush.bf16.msrb.mxu3 %v1536_v25  ;;  %v1569_v25 = vld [vmem:[#allocation7 + $0x2c8] sm:$0xff] }
  0x8f   :  { %v82_v26 = vpop.xlane.xlu0 %81 }
  0x90   :  { %v83_v27 = vadd.f32 1e-12, %v82_v26  ;;  %v105_v26 = vld [vmem:[#allocation5 + $0x10] sm:$0xff] }
  0x92   :  { %1583 = vrsqrt.f32 %v83_v27  ;;  %vm90_vm1 = vweird.f32 %v83_v27 }
  0x98   :  { %v1584_v28 = vpop.eup %1583 }
  0x99   :  { %v85_v29 = vmul.f32 %v1584_v28, %v83_v27  ;;  %vm91_vm0 = vweird.f32 %v1584_v28  ;;  %v132_v27 = vunpack.c.l.b16 %v104_v23 }
  0x9a   :  { %vm92_vm2 = vmor %vm90_vm1, %vm91_vm0 }
  0x9b   :  { %v86_v30 = vmul.f32 %v1584_v28, %v85_v29  ;;  %v1544_v29 = vld [vmem:[#allocation7 + $0x200] sm:$0xff] }
  0x9d   :  { %v87_v31 = vmul.f32 0.5, %v86_v30  ;;  %v1552_v30 = vld [vmem:[#allocation7 + $0x240] sm:$0xff] }
  0x9f   :  { %v88_v32 = vsub.f32 1.5, %v87_v31  ;;  %v134_v31 = vunpack.c.l.b16 %v105_v26 }
  0xa1   :  { %v89_v33 = vmul.f32 %v1584_v28, %v88_v32  ;;  %v135_v32 = vunpack.c.h.b16 %v105_v26 }
  0xa3   :  { %v93_v34 = vsel %vm92_vm2, %v1584_v28, %v89_v33  ;;  %v133_v28 = vunpack.c.h.b16 %v104_v23  ;;  %v1560_v33 = vld [vmem:[#allocation7 + $0x280] sm:$0xff] }
  0xa4   :  { %v94_v35 = vmul.f32 %v93_v34, %v1727_v3  ;;  %v95_v36 = vmul.f32 %v93_v34, %v1729_v4  ;;  %v96_v37 = vmul.f32 %v93_v34, %v1731_v5  ;;  %v97_v38 = vmul.f32 %v93_v34, %v1733_v6  ;;  %v1575_v3 = vld [vmem:[#allocation7 + $0x2f8] sm:$0xff]  ;;  %v1550_v4 = vld [vmem:[#allocation7 + $0x230] sm:$0xff] }
  0xa5   :  { %v1558_v5 = vld [vmem:[#allocation7 + $0x270] sm:$0xff]  ;;  %v98_v6 = vmul.f32 %v93_v34, %v1735_v11  ;;  %v99_v52 = vmul.f32 %v93_v34, %v1743_v18  ;;  %v1548_v11 = vld [vmem:[#allocation7 + $0x220] sm:$0xff] }
  0xa6   :  { %v100_v39 = vpack.c.bf16 %v95_v36, %v94_v35  ;;  %v101_v40 = vpack.c.bf16 %v97_v38, %v96_v37  ;;  %v1556_v18 = vld [vmem:[#allocation7 + $0x260] sm:$0xff]  ;;  %v138_v35 = vpack.c.b16 %v132_v27, %v132_v27  ;;  %v139_v36 = vpack.c.b16 %v133_v28, %v133_v28 }
  0xa7   :  { %v102_v57 = vpack.c.bf16 %v99_v52, %v98_v6  ;;  %v1568_v34 = vld [vmem:[#allocation7 + $0x2c0] sm:$0xff]  ;;  %v140_v37 = vpack.c.b16 %v134_v31, %v134_v31  ;;  %v141_v38 = vpack.c.b16 %v135_v32, %v135_v32 }
  0xa8   :  { %v109_v41 = vunpack.c.l.b16 %v100_v39  ;;  %v110_v42 = vunpack.c.h.b16 %v100_v39  ;;  %v111_v43 = vunpack.c.l.b16 %v101_v40  ;;  %v112_v44 = vunpack.c.h.b16 %v101_v40 }
  0xa9   :  { %v113_v63 = vunpack.c.l.b16 %v102_v57  ;;  %v114_v0 = vunpack.c.h.b16 %v102_v57 }
  0xaa   :  { %v115_v45 = vpack.c.b16 %v109_v41, %v109_v41  ;;  %v116_v46 = vpack.c.b16 %v110_v42, %v110_v42  ;;  %v117_v47 = vpack.c.b16 %v111_v43, %v111_v43  ;;  %v118_v48 = vpack.c.b16 %v112_v44, %v112_v44  ;;  %v1582_v41 = vld [vmem:[%s1766_s3] ss:$0 sm:$0xff]  ;;  %s1692_s3 = smov [#allocation8]  }
  0xab   :  { %v119_v9 = vpack.c.b16 %v113_v63, %v113_v63  ;;  %v120_v10 = vpack.c.b16 %v114_v0, %v114_v0  ;;  %s1083_s5 = sshll.u32 %s1692_s3, 4  ;;  %s1084_s5 = int_to_ptr.vmem [resolvable:$true] %s1083_s5 }
  0xac   :  { %928 = vmatmul.bf16.vlgmr.msra.gmra.mxu0 %v115_v45  ;;  %941 = vmatmul.bf16.vlgmr.msra.gmra.mxu1 %v116_v46 }
  0xad   :  { %954 = vmatmul.bf16.vlgmr.msra.gmra.mxu2 %v117_v47  ;;  %967 = vmatmul.bf16.vlgmr.msra.gmra.mxu3 %v118_v48 }
  0xae   :  { %1024 = vmatpush.bf16.msra.mxu0 %v1551_v49  ;;  %1037 = vmatpush.bf16.msra.mxu1 %v1559_v50 }
  0xaf   :  { %1050 = vmatpush.bf16.msra.mxu2 %v1567_v51  ;;  %1063 = vmatpush.bf16.msra.mxu3 %v1575_v3 }
  0xb2   :  { %1025 = vmatpush.bf16.msra.mxu0 %v1550_v4  ;;  %1038 = vmatpush.bf16.msra.mxu1 %v1558_v5 }
  0xb3   :  { %1051 = vmatpush.bf16.msra.mxu2 %v1566_v53  ;;  %1064 = vmatpush.bf16.msra.mxu3 %v1574_v54 }
  0xb6   :  { %1026 = vmatpush.bf16.msra.mxu0 %v1549_v55  ;;  %1039 = vmatpush.bf16.msra.mxu1 %v1557_v56 }
  0xb7   :  { %1052 = vmatpush.bf16.msra.mxu2 %v1565_v59  ;;  %1065 = vmatpush.bf16.msra.mxu3 %v1573_v60 }
  0xba   :  { %1027 = vmatpush.bf16.msra.mxu0 %v1548_v11  ;;  %1040 = vmatpush.bf16.msra.mxu1 %v1556_v18 }
  0xbb   :  { %1053 = vmatpush.bf16.msra.mxu2 %v1564_v1  ;;  %1066 = vmatpush.bf16.msra.mxu3 %v1572_v2 }
  0xbc   :  { %980 = vmatmul.bf16.vlgmr.msrb.gmra.mxu0 %v119_v9  ;;  %993 = vmatmul.bf16.vlgmr.msrb.gmra.mxu1 %v120_v10 }
  0xbd   :  { %1006 = vmatmul.bf16.vlgmr.msrb.gmra.mxu2 %v136_v7  ;;  %1019 = vmatmul.bf16.vlgmr.msrb.gmra.mxu3 %v137_v8 }
  0xbe   :  { %1028 = vmatpush.bf16.msra.mxu0 %v1547_v12  ;;  %1041 = vmatpush.bf16.msra.mxu1 %v1555_v13 }
  0xbf   :  { %1054 = vmatpush.bf16.msra.mxu2 %v1563_v14  ;;  %1067 = vmatpush.bf16.msra.mxu3 %v1571_v15 }
  0xc2   :  { %1029 = vmatpush.bf16.msra.mxu0 %v1546_v16  ;;  %1042 = vmatpush.bf16.msra.mxu1 %v1554_v17 }
  0xc3   :  { %1055 = vmatpush.bf16.msra.mxu2 %v1562_v19  ;;  %1068 = vmatpush.bf16.msra.mxu3 %v1570_v20 }
  0xc6   :  { %1030 = vmatpush.bf16.msra.mxu0 %v1545_v21  ;;  %1043 = vmatpush.bf16.msra.mxu1 %v1553_v22 }
  0xc7   :  { %1056 = vmatpush.bf16.msra.mxu2 %v1561_v24  ;;  %1069 = vmatpush.bf16.msra.mxu3 %v1569_v25 }
  0xca   :  { %1031 = vmatpush.bf16.msra.mxu0 %v1544_v29  ;;  %1044 = vmatpush.bf16.msra.mxu1 %v1552_v30 }
  0xcb   :  { %1057 = vmatpush.bf16.msra.mxu2 %v1560_v33  ;;  %1070 = vmatpush.bf16.msra.mxu3 %v1568_v34 }
  0xcd   :  { %1032 = vmatmul.bf16.vlgmr.msra.gmra.mxu0 %v138_v35  ;;  %1045 = vmatmul.bf16.vlgmr.msra.gmra.mxu1 %v139_v36 }
  0xce   :  { %1058 = vmatmul.bf16.vlgmr.msra.gmra.mxu2 %v140_v37  ;;  %1071 = vmatmul.bf16.vlgmr.msra.gmra.mxu3 %v141_v38 }
 0x129   :  { %v929_v39 = vpop.f32.mrf.mxu0  ;;  %v942_v40 = vpop.f32.mrf.mxu1 }
 0x12a   :  { %v930_v46 = vadd.f32 %v1582_v41, %v929_v39 }
 0x12c   :  { %v943_v47 = vadd.f32 %v942_v40, %v930_v46 }
 0x130   :  { %v955_v42 = vpop.f32.mrf.mxu2  ;;  %v968_v43 = vpop.f32.mrf.mxu3 }
 0x131   :  { %v931_v44 = vpop.f32.mrf.mxu0  ;;  %v944_v45 = vpop.f32.mrf.mxu1  ;;  %v956_v3 = vadd.f32 %v955_v42, %v943_v47 }
 0x133   :  { %v969_v4 = vadd.f32 %v968_v43, %v956_v3 }
 0x138   :  { %v957_v48 = vpop.f32.mrf.mxu2  ;;  %v970_v49 = vpop.f32.mrf.mxu3 }
 0x139   :  { %v981_v50 = vpop.f32.mrf.mxu0  ;;  %v994_v51 = vpop.f32.mrf.mxu1 }
 0x13a   :  { %v982_v5 = vadd.f32 %v981_v50, %v969_v4 }
 0x13c   :  { %v995_v55 = vadd.f32 %v994_v51, %v982_v5 }
 0x140   :  { %v1007_v6 = vpop.f32.mrf.mxu2  ;;  %v1020_v52 = vpop.f32.mrf.mxu3 }
 0x141   :  { %v983_v53 = vpop.f32.mrf.mxu0  ;;  %v996_v54 = vpop.f32.mrf.mxu1  ;;  %v1008_v56 = vadd.f32 %v1007_v6, %v995_v55 }
 0x143   :  { %v1021_v59 = vadd.f32 %v1020_v52, %v1008_v56 }
 0x148   :  { %v1009_v57 = vpop.f32.mrf.mxu2  ;;  %v1022_v58 = vpop.f32.mrf.mxu3 }
 0x14a   :  { %v1033_v60 = vpop.f32.mrf.mxu0  ;;  %v1046_v61 = vpop.f32.mrf.mxu1 }
 0x14b   :  { %v1034_v62 = vadd.f32 %v1033_v60, %v1021_v59 }
 0x14d   :  { %v1047_v11 = vadd.f32 %v1046_v61, %v1034_v62 }
 0x151   :  { %v1059_v18 = vpop.f32.mrf.mxu2  ;;  %v1072_v63 = vpop.f32.mrf.mxu3 }
 0x152   :  { %v1060_v0 = vadd.f32 %v1059_v18, %v1047_v11  ;;  %v1035_v1 = vpop.f32.mrf.mxu0  ;;  %v1048_v2 = vpop.f32.mrf.mxu1 }
 0x154   :  { %v1073_v7 = vadd.f32 %v1072_v63, %v1060_v0 }
 0x156   :  { %v1076_v8 = vpack.c.bf16 %v1073_v7, %v1073_v7 }
 0x158   :  { %1077 = vst [vmem:[#allocation8] sm:$0xf] %v1076_v8 }
 0x159   :  { %v1061_v9 = vpop.f32.mrf.mxu2  ;;  %v1074_v10 = vpop.f32.mrf.mxu3  ;;  %1088 = dma.vmem_to_hbm [thread:$0]  %s1084_s5, 64, %s1086_s8, [#allocation4]  }
 0x15a   :  { %1685 = dma.done.wait [#allocation4], 64  }
 0x15b   :  { %1686 = vsyncadd [#allocation4], 4294967232 }
 0x15c   :  { %1093 = vsyncpa [#allocation3], 1 }
 0x15d   :  { %1094 = vsyncpa [#allocation6], 1 }
 0x15e   :  { %1095 = vsyncpa [#allocation4], 1 }

</bundles_post_ra>
